<compile_context>
chip_gen: v5e
topology: v5e:2x2
jax: 0.10.0
libtpu: 0.0.40
codegen_flags: <defaults>
</compile_context>

<pallas_src>
import functools
import math

import jax
import jax.numpy as jnp
from jax import lax
from jax.experimental import pallas as pl
from jax.experimental.pallas import tpu as pltpu


def _round_up(x, m):
    return ((x + m - 1) // m) * m


# ----------------------------------------------------------------------------
# Tiled linear kernel:  o = x @ W + b   (bf16 operands, f32 accumulation)
# ----------------------------------------------------------------------------
def _linear_kernel(x_ref, w_ref, b_ref, o_ref, acc_ref):
    """Blocks: x (tm, tk), w (tk, tn), b (1, tn), o (tm, tn); acc f32 scratch."""
    @pl.when(pl.program_id(2) == 0)
    def _init():
        acc_ref[...] = jnp.zeros_like(acc_ref)

    acc_ref[...] += jnp.dot(x_ref[...], w_ref[...],
                            preferred_element_type=jnp.float32)

    @pl.when(pl.program_id(2) == pl.num_programs(2) - 1)
    def _finalize():
        o_ref[...] = (acc_ref[...] + b_ref[...]).astype(o_ref.dtype)


def linear_pallas(x2d, w, b, *, out_dtype=None, tm=512, tn=512, tk=512):
    """x2d: (M, K), w: (K, N), b: (N,) -> (M, N). Tiled, K-reduction grid."""
    M, K = x2d.shape
    Kw, N = w.shape
    assert K == Kw
    out_dtype = x2d.dtype if out_dtype is None else out_dtype

    # Full-extent block if the dim fits in one tile (always legal); otherwise
    # the MXU/lane-aligned target tile with zero-padding up to a multiple.
    tm = M if M <= tm else tm
    tk = K if K <= tk else tk
    tn = N if N <= tn else tn
    Mp, Kp, Np = _round_up(M, tm), _round_up(K, tk), _round_up(N, tn)

    xp = x2d if (Mp == M and Kp == K) else jnp.pad(x2d, ((0, Mp - M), (0, Kp - K)))
    wp = w if (Kp == K and Np == N) else jnp.pad(w, ((0, Kp - K), (0, Np - N)))
    bp = (b if Np == N else jnp.pad(b, (0, Np - N))).reshape(1, Np).astype(jnp.float32)

    out = pl.pallas_call(
        _linear_kernel,
        out_shape=jax.ShapeDtypeStruct((Mp, Np), out_dtype),
        grid=(Mp // tm, Np // tn, Kp // tk),
        in_specs=[
            pl.BlockSpec((tm, tk), lambda i, j, k: (i, k)),
            pl.BlockSpec((tk, tn), lambda i, j, k: (k, j)),
            pl.BlockSpec((1, tn), lambda i, j, k: (0, j)),
        ],
        out_specs=pl.BlockSpec((tm, tn), lambda i, j, k: (i, j)),
        scratch_shapes=[pltpu.VMEM((tm, tn), jnp.float32)],
        compiler_params=pltpu.CompilerParams(
            dimension_semantics=("parallel", "parallel", "arbitrary")),
    )(xp, wp, bp)

    if Mp != M or Np != N:
        out = out[:M, :N]
    return out


# ----------------------------------------------------------------------------
# Flash-style causal attention fed from the fused QKV slab
# ----------------------------------------------------------------------------
_MASK_VALUE = -1e30  # large finite negative (avoids inf-inf NaN paths)


def _flash_causal_kernel(q_ref, k_ref, v_ref, o_ref, m_ref, l_ref, acc_ref,
                         *, heads_per_block, head_dim, tq, tkv):
    """q/o blocks (1, tq, G*Dh); k/v blocks (1, tkv, G*Dh); head-major columns.

    Scratch: m, l: (G, tq, 1) f32;  acc: (tq, G*Dh) f32.
    Grid: (B, H//G, q_tiles, kv_tiles); kv is the (arbitrary) reduction axis.
    """
    qi = pl.program_id(2)
    ki = pl.program_id(3)
    q0 = qi * tq
    k0 = ki * tkv
    scale = 1.0 / math.sqrt(head_dim)

    @pl.when(ki == 0)
    def _init():
        m_ref[...] = jnp.full_like(m_ref, _MASK_VALUE)
        l_ref[...] = jnp.zeros_like(l_ref)
        acc_ref[...] = jnp.zeros_like(acc_ref)

    def _update(apply_mask):
        q_all = q_ref[0]          # (tq,  G*Dh) bf16
        k_all = k_ref[0]          # (tkv, G*Dh)
        v_all = v_ref[0]
        if apply_mask:            # built once, only on diagonal tiles
            row = q0 + lax.broadcasted_iota(jnp.int32, (tq, tkv), 0)
            col = k0 + lax.broadcasted_iota(jnp.int32, (tq, tkv), 1)
            visible = col <= row
        for h in range(heads_per_block):   # == 1 iteration at lane-aligned Dh
            sl = slice(h * head_dim, (h + 1) * head_dim)
            # scores: contract last dims directly (no k.T / XLU transpose)
            s = lax.dot_general(q_all[:, sl], k_all[:, sl],
                                (((1,), (1,)), ((), ())),
                                preferred_element_type=jnp.float32) * scale
            if apply_mask:
                s = jnp.where(visible, s, _MASK_VALUE)
            m_prev = m_ref[h]                                    # (tq, 1)
            m_new = jnp.maximum(m_prev, jnp.max(s, axis=-1, keepdims=True))
            alpha = jnp.exp(m_prev - m_new)
            p = jnp.exp(s - m_new)
            l_ref[h] = alpha * l_ref[h] + jnp.sum(p, axis=-1, keepdims=True)
            acc_ref[:, sl] = alpha * acc_ref[:, sl] + jnp.dot(
                p.astype(v_all.dtype), v_all[:, sl],
                preferred_element_type=jnp.float32)
            m_ref[h] = m_new

    # Tile classification: fully visible (no mask), diagonal (mask), or
    # fully masked (skipped entirely; its DMA was already elided by the
    # clamped index_map).
    fully_visible = (k0 + tkv - 1) <= q0
    diagonal = jnp.logical_and(k0 <= q0 + tq - 1, k0 + tkv - 1 > q0)

    @pl.when(fully_visible)
    def _no_mask():
        _update(False)

    @pl.when(diagonal)
    def _with_mask():
        _update(True)

    @pl.when(ki == pl.num_programs(3) - 1)
    def _finalize():
        for h in range(heads_per_block):
            sl = slice(h * head_dim, (h + 1) * head_dim)
            acc_ref[:, sl] = acc_ref[:, sl] * pl.reciprocal(l_ref[h], approx=False)
        # single lane-dense (tq, G*Dh) store
        o_ref[0] = acc_ref[...].astype(o_ref.dtype)


def causal_attention_pallas(qkv, num_heads, head_dim, *, tq=256, tkv=256):
    """qkv: (B, S, 3*d_out) fused projection, columns = [Q | K | V], each
    head-major.  Returns (B, S, d_out) already in the PyTorch
    `context.transpose(1,2).reshape(B,S,d_out)` layout (no post-transpose)."""
    B, S, three = qkv.shape
    d_out = three // 3
    H, Dh = num_heads, head_dim

    # Heads handled per kernel block: smallest divisor g of H such that the
    # block column width g*Dh is a multiple of 128 (lane-aligned); otherwise
    # fall back to the full head-major slab (block == full last dim).
    G = H
    for g in range(1, H + 1):
        if H % g == 0 and (g * Dh) % 128 == 0:
            G = g
            break
    cw = G * Dh

    tq = min(tq, _round_up(S, 8))
    tkv = min(tkv, _round_up(S, 8))
    Sp = _round_up(S, math.lcm(tq, tkv))
    if Sp != S:
        qkv = jnp.pad(qkv, ((0, 0), (0, Sp - S), (0, 0)))
    n_q, n_kv = Sp // tq, Sp // tkv

    def kv_block(qi, ki):
        # Clamp fully-masked (future) KV tiles onto the last useful one so the
        # HBM->VMEM DMA is skipped (block index unchanged between grid steps);
        # the kernel's pl.when already skips their compute.
        return jnp.minimum(ki, (qi * tq + tq - 1) // tkv)

    direct = (cw % 128 == 0)
    if direct:
        # Feed straight from the fused slab: three specs on the same array.
        ncq = d_out // cw                       # column blocks in the Q section
        q_spec = pl.BlockSpec((1, tq, cw), lambda b, hg, qi, ki: (b, qi, hg))
        k_spec = pl.BlockSpec(
            (1, tkv, cw), lambda b, hg, qi, ki: (b, kv_block(qi, ki), ncq + hg))
        v_spec = pl.BlockSpec(
            (1, tkv, cw), lambda b, hg, qi, ki: (b, kv_block(qi, ki), 2 * ncq + hg))
        args = (qkv, qkv, qkv)
    else:
        # Small-d_out fallback: one cheap XLA slice each, so every block equals
        # the full last dim and always satisfies the (8,128) layout rule.
        q_a = qkv[..., 0 * d_out:1 * d_out]
        k_a = qkv[..., 1 * d_out:2 * d_out]
        v_a = qkv[..., 2 * d_out:3 * d_out]
        q_spec = pl.BlockSpec((1, tq, cw), lambda b, hg, qi, ki: (b, qi, hg))
        k_spec = pl.BlockSpec(
            (1, tkv, cw), lambda b, hg, qi, ki: (b, kv_block(qi, ki), hg))
        v_spec = k_spec
        args = (q_a, k_a, v_a)

    out = pl.pallas_call(
        functools.partial(_flash_causal_kernel, heads_per_block=G,
                          head_dim=Dh, tq=tq, tkv=tkv),
        out_shape=jax.ShapeDtypeStruct((B, Sp, d_out), qkv.dtype),
        grid=(B, H // G, n_q, n_kv),
        in_specs=[q_spec, k_spec, v_spec],
        out_specs=pl.BlockSpec((1, tq, cw), lambda b, hg, qi, ki: (b, qi, hg)),
        scratch_shapes=[
            pltpu.VMEM((G, tq, 1), jnp.float32),    # running max m
            pltpu.VMEM((G, tq, 1), jnp.float32),    # running sum l
            pltpu.VMEM((tq, cw), jnp.float32),      # output accumulator
        ],
        compiler_params=pltpu.CompilerParams(
            dimension_semantics=("parallel", "parallel", "parallel", "arbitrary"),
            vmem_limit_bytes=64 * 1024 * 1024),
    )(*args)

    if Sp != S:
        out = out[:, :S, :]
    return out


# ----------------------------------------------------------------------------
# Module-equivalent forward
# ----------------------------------------------------------------------------
class MHAScaledDotProductPallas:
    def __init__(self, d_in, d_out, num_heads, context_length,
                 dropout=0.0, qkv_bias=False, key=None,
                 compute_dtype=jnp.bfloat16):
        assert d_out % num_heads == 0, "embed_dim is indivisible by num_heads"
        self.num_heads = num_heads
        self.head_dim = d_out // num_heads
        self.d_out = d_out
        self.context_length = context_length
        self.dropout = dropout  # TODO(synk): dropout ignored (eval mode -> dropout_p = 0.0)
        self.compute_dtype = compute_dtype

        key = jax.random.PRNGKey(42) if key is None else key
        k1, k2, k3 = jax.random.split(key, 3)

        lim_qkv = 1.0 / math.sqrt(d_in)
        lim_proj = 1.0 / math.sqrt(d_out)
        # Stored as (in_features, out_features): kernel computes x @ W.
        # QKV columns are [Q | K | V], each head-major within — this matches the
        # PyTorch view(B,S,3,H,Dh).permute(2,0,3,1,4) split without ever
        # materializing the permuted 5-D tensor.
        self.w_qkv = jax.random.uniform(
            k1, (d_in, 3 * d_out), jnp.float32, -lim_qkv, lim_qkv)
        self.b_qkv = jnp.zeros((3 * d_out,), jnp.float32)   # qkv_bias=False
        self.w_proj = jax.random.uniform(
            k2, (d_out, d_out), jnp.float32, -lim_proj, lim_proj)
        self.b_proj = jax.random.uniform(
            k3, (d_out,), jnp.float32, -lim_proj, lim_proj)

        # bf16 MXU operand copies (accumulation stays f32 inside the kernels).
        self.w_qkv_c = self.w_qkv.astype(compute_dtype)
        self.w_proj_c = self.w_proj.astype(compute_dtype)

    def __call__(self, x):
        B, S, d_in = x.shape
        d_out = self.d_out
        xc = x.reshape(B * S, d_in).astype(self.compute_dtype)

        # Fused QKV projection: one tiled GEMM over the activations.
        qkv = linear_pallas(xc, self.w_qkv_c, self.b_qkv,
                            out_dtype=self.compute_dtype).reshape(B, S, 3 * d_out)

        # Flash-style causal SDPA fed straight from the fused slab; output is
        # already in the (B, S, H*Dh) layout expected by the projection.
        ctx = causal_attention_pallas(qkv, self.num_heads, self.head_dim)

        # Output projection (final result in f32).
        out = linear_pallas(ctx.reshape(B * S, d_out), self.w_proj_c, self.b_proj,
                            out_dtype=jnp.float32)
        return out.reshape(B, S, d_out)


# ----------------------------------------------------------------------------
# Pure-JAX reference (f32, for correctness check)
# ----------------------------------------------------------------------------
def reference_forward(mha, x):
    B, S, d_in = x.shape
    H, Dh, d_out = mha.num_heads, mha.head_dim, mha.d_out
    qkv = x.reshape(B * S, d_in) @ mha.w_qkv + mha.b_qkv
    qkv = qkv.reshape(B, S, 3, H, Dh).transpose(2, 0, 3, 1, 4)
    q, k, v = qkv[0], qkv[1], qkv[2]
    scale = 1.0 / math.sqrt(Dh)
    scores = jnp.einsum("bhqd,bhkd->bhqk", q, k) * scale
    mask = jnp.tril(jnp.ones((S, S), bool))
    scores = jnp.where(mask, scores, -jnp.inf)
    p = jax.nn.softmax(scores, axis=-1)
    ctx = jnp.einsum("bhqk,bhkd->bhqd", p, v)
    ctx = ctx.transpose(0, 2, 1, 3).reshape(B, S, d_out)
    return (ctx.reshape(B * S, d_out) @ mha.w_proj + mha.b_proj).reshape(B, S, d_out)


if __name__ == "__main__":
    # Small shapes consistent with the module's forward
    batch, seq, d_in, d_out, num_heads = 2, 8, 32, 32, 4

    key = jax.random.PRNGKey(0)
    x = jax.random.normal(key, (batch, seq, d_in), dtype=jnp.float32)

    mha = MHAScaledDotProductPallas(
        d_in=d_in, d_out=d_out, num_heads=num_heads,
        context_length=seq, dropout=0.0, qkv_bias=False,
        key=jax.random.PRNGKey(42))

    out = mha(x)
    out = jax.block_until_ready(out)

    ref = reference_forward(mha, x)
    assert out.shape == (batch, seq, d_out)
    # bf16 MXU operands (f32 accumulation) vs f32 reference -> loosened tolerance.
    assert jnp.allclose(out, ref, atol=2.5e-2, rtol=2.5e-2), "Pallas output mismatch"

    print("KERNEL_OK")
</pallas_src>

<mosaic_0001>
module attributes {stable_mosaic.version = 11 : i64} {
  func.func @_linear_kernel(%arg0: i32, %arg1: i32, %arg2: i32, %arg3: memref<16x32xbf16, #tpu.memory_space<vmem>>, %arg4: memref<32x96xbf16, #tpu.memory_space<vmem>>, %arg5: memref<1x96xf32, #tpu.memory_space<vmem>>, %arg6: memref<16x96xbf16, #tpu.memory_space<vmem>>, %arg7: memref<16x96xf32, #tpu.memory_space<vmem>>) attributes {dimension_semantics = [#tpu.dimension_semantics<parallel>, #tpu.dimension_semantics<parallel>, #tpu.dimension_semantics<arbitrary>], iteration_bounds = array<i64: 1, 1, 1>, scalar_prefetch = 0 : i64, scratch_operands = 1 : i64, tpu.core_type = #tpu.core_type<tc>, window_params = [{transform_indices = @transform_0, window_bounds = array<i64: 16, 32>}, {transform_indices = @transform_1, window_bounds = array<i64: 32, 96>}, {transform_indices = @transform_2, window_bounds = array<i64: 1, 96>}, {transform_indices = @transform_3, window_bounds = array<i64: 16, 96>}]} {
    %c0_i32 = arith.constant 0 : i32
    %0 = arith.cmpi eq, %arg2, %c0_i32 : i32
    %1 = arith.extui %0 : i1 to i32
    %c0_i32_0 = arith.constant 0 : i32
    %2 = arith.cmpi ne, %1, %c0_i32_0 : i32
    scf.if %2 {
      %cst_10 = arith.constant 0.000000e+00 : f32
      %12 = vector.broadcast %cst_10 : f32 to vector<16x96xf32>
      %c0_11 = arith.constant 0 : index
      %c0_12 = arith.constant 0 : index
      %13 = vector.load %arg7[%c0_11, %c0_12] : memref<16x96xf32, #tpu.memory_space<vmem>>, vector<16x96xf32>
      tpu.vector_store %arg7[%c0_11, %c0_12], %12 {strides = array<i32>} : memref<16x96xf32, #tpu.memory_space<vmem>>, vector<16x96xf32>,
    } else {
    }
    %c0 = arith.constant 0 : index
    %c0_1 = arith.constant 0 : index
    %3 = vector.load %arg7[%c0, %c0_1] : memref<16x96xf32, #tpu.memory_space<vmem>>, vector<16x96xf32>
    %c0_2 = arith.constant 0 : index
    %c0_3 = arith.constant 0 : index
    %4 = vector.load %arg3[%c0_2, %c0_3] : memref<16x32xbf16, #tpu.memory_space<vmem>>, vector<16x32xbf16>
    %c0_4 = arith.constant 0 : index
    %c0_5 = arith.constant 0 : index
    %5 = vector.load %arg4[%c0_4, %c0_5] : memref<32x96xbf16, #tpu.memory_space<vmem>>, vector<32x96xbf16>
    %cst = arith.constant dense<0.000000e+00> : vector<16x96xf32>
    %6 = tpu.matmul %4, %5, %cst {dimension_numbers = #tpu.dot_dimension_numbers<[1], [0], [0], [1], [0, 0, 1, 1], [], []>} : vector<16x32xbf16>, vector<32x96xbf16>, vector<16x96xf32> -> vector<16x96xf32>
    %7 = arith.addf %3, %6 : vector<16x96xf32>
    %c0_6 = arith.constant 0 : index
    %c0_7 = arith.constant 0 : index
    %8 = vector.load %arg7[%c0_6, %c0_7] : memref<16x96xf32, #tpu.memory_space<vmem>>, vector<16x96xf32>
    tpu.vector_store %arg7[%c0_6, %c0_7], %7 {strides = array<i32>} : memref<16x96xf32, #tpu.memory_space<vmem>>, vector<16x96xf32>,
    %c0_i32_8 = arith.constant 0 : i32
    %9 = arith.cmpi eq, %arg2, %c0_i32_8 : i32
    %10 = arith.extui %9 : i1 to i32
    %c0_i32_9 = arith.constant 0 : i32
    %11 = arith.cmpi ne, %10, %c0_i32_9 : i32
    scf.if %11 {
      %c0_10 = arith.constant 0 : index
      %c0_11 = arith.constant 0 : index
      %12 = vector.load %arg7[%c0_10, %c0_11] : memref<16x96xf32, #tpu.memory_space<vmem>>, vector<16x96xf32>
      %c0_12 = arith.constant 0 : index
      %c0_13 = arith.constant 0 : index
      %13 = vector.load %arg5[%c0_12, %c0_13] : memref<1x96xf32, #tpu.memory_space<vmem>>, vector<1x96xf32>
      %14 = vector.broadcast %13 : vector<1x96xf32> to vector<16x96xf32>
      %15 = arith.addf %12, %14 : vector<16x96xf32>
      %16 = arith.truncf %15 : vector<16x96xf32> to vector<16x96xbf16>
      %c0_14 = arith.constant 0 : index
      %c0_15 = arith.constant 0 : index
      %17 = vector.load %arg6[%c0_14, %c0_15] : memref<16x96xbf16, #tpu.memory_space<vmem>>, vector<16x96xbf16>
      tpu.vector_store %arg6[%c0_14, %c0_15], %16 {strides = array<i32>} : memref<16x96xbf16, #tpu.memory_space<vmem>>, vector<16x96xbf16>,
    } else {
    }
    return
  }
  func.func @transform_0(%arg0: i32, %arg1: i32, %arg2: i32) -> (i32, i32) {
    %c0_i32 = arith.constant 0 : i32
    return %arg0, %arg2 : i32, i32
  }
  func.func @transform_1(%arg0: i32, %arg1: i32, %arg2: i32) -> (i32, i32) {
    %c0_i32 = arith.constant 0 : i32
    return %arg2, %arg1 : i32, i32
  }
  func.func @transform_2(%arg0: i32, %arg1: i32, %arg2: i32) -> (i32, i32) {
    %c0_i32 = arith.constant 0 : i32
    %c0_i32_0 = arith.constant 0 : i32
    return %c0_i32, %arg1 : i32, i32
  }
  func.func @transform_3(%arg0: i32, %arg1: i32, %arg2: i32) -> (i32, i32) {
    %c0_i32 = arith.constant 0 : i32
    return %arg0, %arg1 : i32, i32
  }
}

</mosaic_0001>

<bundles_post_ra>
// kernel: tpu_custom_call.1
= control target key start
LH: loop header
LB: loop body
LE: loop exit
PB: predicated region body
PF: predicated region fallthrough
CT: control target
= control target key end

     0   :  { %8 = vsyncpa [#allocation4], 0  ;;  %s291_s0 = inlined_call_operand.hbm [shape: bf16[16,32], index: 0, kind: input, shape index: {}]   ;;  %s292_s1 = inlined_call_operand.hbm [shape: bf16[32,96], index: 1, kind: input, shape index: {}]   ;;  %s293_s2 = inlined_call_operand.vmem [shape: f32[1,96], index: 2, kind: input, shape index: {}]   ;;  %s294_s3 = inlined_call_operand.hbm [shape: bf16[16,96], index: 3, kind: output, shape index: {}]  }
   0x1   :  { %9 = vsyncpa [#allocation7], 0 }
   0x2   :  { %10 = vsyncpa [#allocation5], 0  ;;  %s15_s14 = sshll.u32 %s291_s0, 4  ;;  %s240_s15 = smov [#allocation3]   ;;  %s16_s14 = int_to_ptr.hbm [resolvable:$true] %s15_s14 }
   0x3   :  { %s17_s16 = sshll.u32 %s240_s15, 4  ;;  %s28_s19 = sshll.u32 %s292_s1, 4  ;;  %s18_s16 = int_to_ptr.vmem [resolvable:$true] %s17_s16  ;;  %s29_s19 = int_to_ptr.hbm [resolvable:$true] %s28_s19 }
   0x4   :  { %s241_s20 = smov 64   ;;  %s242_s21 = smov 4  }
   0x5   :  { %23 = dma.hbm_to_vmem [thread:$0]  %s16_s14, 128, %s18_s16, [#allocation4], %s241_s20, %s241_s20, %s242_s21  }
   0x6   :  { %s243_s22 = smov [#allocation6]  }
   0x7   :  { %s30_s23 = sshll.u32 %s243_s22, 4  ;;  %s31_s23 = int_to_ptr.vmem [resolvable:$true] %s30_s23 }
   0x8   :  { %36 = dma.hbm_to_vmem [thread:$0]  %s29_s19, 256, %s31_s23, [#allocation7], %s241_s20, %s241_s20, %s242_s21  }
   0x9   :  { %234 = dma.done.wait [#allocation4], 128  }
   0xa   :  { %235 = vsyncadd [#allocation4], 4294967168 }
   0xb   :  { %236 = dma.done.wait [#allocation7], 256  }
   0xc   :  { %237 = vsyncadd [#allocation7], 4294967040  ;;  %vm52_vm0 = vcmask 785408   ;;  %v244_v0 = vmov 0.0   ;;  %v154_v1 = vld [vmem:[#allocation6 + $0x8] sm:$0xff]  ;;  %v153_v2 = vld [vmem:[#allocation6] sm:$0xff] }
   0xd   :  { %53 = vst.msk [vmem:[#allocation2] sm:$0xff] %vm52_vm0, %v244_v0  ;;  %90 = vmatpush.bf16.msra.mxu0 %v154_v1  ;;  %v152_v3 = vld [vmem:[#allocation3] sm:$0xff]  ;;  %vm80_vm1 = vcmask 261120   ;;  %v161_v8 = vld [vmem:[%s293_s2] ss:$0 sm:$0xff]  ;;  %vm116_vm2 = vcmask 781312  }
   0xe   :  { %54 = vst.msk [vmem:[#allocation2 + $0x8] sm:$0xff] %vm52_vm0, %v244_v0  ;;  %s245_s24 = smov [#allocation8]   ;;  %s125_s28 = sshll.u32 %s294_s3, 4  ;;  %s126_s28 = int_to_ptr.hbm [resolvable:$true] %s125_s28 }
   0xf   :  { %s123_s25 = sshll.u32 %s245_s24, 4  ;;  %s124_s25 = int_to_ptr.vmem [resolvable:$true] %s123_s25 }
  0x11   :  { %91 = vmatpush.bf16.msra.mxu0 %v153_v2 }
  0x14   :  { %151 = vmatmul.msk.bf16.vlgmr.msra.gmra.mxu0 %vm80_vm1, %v152_v3  ;;  %v55_v4 = vld [vmem:[#allocation2] sm:$0xff] }
  0x15   :  { %v56_v7 = vld [vmem:[#allocation2 + $0x8] sm:$0xff] }
  0x91   :  { %v93_v5 = vpop.f32.mrf.mxu0 }
  0x92   :  { %v98_v6 = vadd.f32 %v93_v5, %v55_v4 }
  0x94   :  { %101 = vst.msk [vmem:[#allocation2] sm:$0xff] %vm52_vm0, %v98_v6 }
  0x99   :  { %v95_v9 = vpop.f32.mrf.mxu0 }
  0x9a   :  { %v99_v10 = vadd.f32 %v95_v9, %v56_v7 }
  0x9b   :  { %v106_v11 = vld [vmem:[#allocation2] sm:$0xff] }
  0x9c   :  { %102 = vst.msk [vmem:[#allocation2 + $0x8] sm:$0xff] %vm52_vm0, %v99_v10  ;;  %v112_v12 = vadd.f32 %v161_v8, %v106_v11 }
  0x9e   :  { %v114_v13 = vpack.c.bf16 %v112_v12, %v112_v12 }
  0xa0   :  { %117 = vst.msk [vmem:[#allocation8] sm:$0xf] %vm116_vm2, %v114_v13 }
  0xa3   :  { %v107_v14 = vld [vmem:[#allocation2 + $0x8] sm:$0xff] }
  0xa4   :  { %v113_v15 = vadd.f32 %v161_v8, %v107_v14 }
  0xa6   :  { %v115_v16 = vpack.c.bf16 %v113_v15, %v113_v15 }
  0xa8   :  { %118 = vst.msk [vmem:[#allocation8 + $0x4] sm:$0xf] %vm116_vm2, %v115_v16 }
  0xa9   :  { %131 = dma.vmem_to_hbm [thread:$0]  %s124_s25, 128, %s126_s28, [#allocation5], %s241_s20, %s241_s20, %s242_s21  }
  0xaa   :  { %238 = dma.done.wait [#allocation5], 128  }
  0xab   :  { %239 = vsyncadd [#allocation5], 4294967168 }
  0xac   :  { %136 = vsyncpa [#allocation4], 1 }
  0xad   :  { %137 = vsyncpa [#allocation7], 1 }
  0xae   :  { %138 = vsyncpa [#allocation5], 1 }

</bundles_post_ra>
